<compile_context>
chip_gen: v7x
topology: tpu7x:2x2x1
jax: 0.10.0
libtpu: 0.0.40
codegen_flags: <defaults>
</compile_context>

<pallas_src>
import functools

import jax
import jax.numpy as jnp
from jax import lax
from jax.experimental import pallas as pl
from jax.experimental.pallas import tpu as pltpu


# ---------------------------------------------------------------------------
# Helpers
# ---------------------------------------------------------------------------
def _round_up(x, m):
    return (x + m - 1) // m * m


def _pad2d(a, rows, cols):
    return jnp.pad(a, ((0, rows - a.shape[0]), (0, cols - a.shape[1])))


def _vmem_capacity_bytes():
    """Physical VMEM per core (64 MiB v7x, 128 MiB v5e/v6e); safe fallback."""
    try:
        info = pltpu.get_tpu_info()
        cap = getattr(info, "vmem_capacity_bytes", None)
        if cap:
            return int(cap)
    except Exception:
        pass
    return 64 * 2**20


def _compiler_params(sem, need_bytes, cap_bytes):
    vmem_limit = None
    if need_bytes > 12 * 2**20:
        # Never request more than ~90% of physical VMEM (v7x-safe).
        vmem_limit = int(min(int(0.9 * cap_bytes),
                             max(int(1.5 * need_bytes), 32 * 2**20)))
    return pltpu.CompilerParams(dimension_semantics=sem,
                                vmem_limit_bytes=vmem_limit)


def _elu_log_softmax(x, nvalid):
    """log_softmax(elu(x), axis=1) over the first `nvalid` lanes (rest is padding)."""
    e = jnp.where(x > 0, x, jnp.exp(jnp.minimum(x, 0.0)) - 1.0)   # ELU, alpha=1
    col = lax.broadcasted_iota(jnp.int32, x.shape, 1)
    valid = col < nvalid
    e = jnp.where(valid, e, -1e30)                                # mask padded classes
    m = jnp.max(e, axis=1, keepdims=True)
    z = e - m
    lse = jnp.log(jnp.sum(jnp.where(valid, jnp.exp(z), 0.0), axis=1, keepdims=True))
    return z - lse


# ---------------------------------------------------------------------------
# Kernel 1: projection  support = x @ W   (f32, row-tiled)
# ---------------------------------------------------------------------------
def _proj_kernel(x_ref, w_ref, out_ref):
    out_ref[...] = jnp.dot(x_ref[...], w_ref[...],
                           preferred_element_type=jnp.float32)


def _project(x_p, w_p, *, tm, cap_bytes):
    n_pad, in_pad = x_p.shape
    f_pad = w_p.shape[1]
    assert n_pad % tm == 0
    n_tiles = n_pad // tm
    # TODO(synk): weight kept fully resident; K-tile the reduction for very large nfeat.
    need = 4 * 2 * (tm * in_pad + in_pad * f_pad + tm * f_pad)
    return pl.pallas_call(
        _proj_kernel,
        out_shape=jax.ShapeDtypeStruct((n_pad, f_pad), jnp.float32),
        grid_spec=pltpu.PrefetchScalarGridSpec(
            num_scalar_prefetch=0,
            grid=(n_tiles,),
            in_specs=[
                pl.BlockSpec((tm, in_pad), lambda i: (i, 0)),
                pl.BlockSpec((in_pad, f_pad), lambda i: (0, 0)),
            ],
            out_specs=pl.BlockSpec((tm, f_pad), lambda i: (i, 0)),
        ),
        compiler_params=_compiler_params(("parallel",), need, cap_bytes),
    )(x_p, w_p)


# ---------------------------------------------------------------------------
# Kernel 2: APPNP propagation (iterations steps), optionally fused with
# elu + log_softmax on the final state.  adj row tiles are streamed (bf16),
# the full propagation state stays resident in VMEM as bf16 ping/pong buffers,
# `prev` (= support) is streamed as (tm, F) blocks from HBM.
# ---------------------------------------------------------------------------
def _prop_kernel(prev_ref, adj_ref, out_ref, s_a, s_b, *,
                 alpha, tm, fuse_tail, nvalid):
    t = pl.program_id(0)                 # phase: 0 = init, 1..iters = propagation
    i = pl.program_id(1)                 # row-tile index
    last = pl.num_programs(0) - 1
    r0 = pl.multiple_of(i * tm, tm)

    def store_out(rows_f32):
        # Only ever called on the final phase (gated below).
        if fuse_tail:
            rows_f32 = _elu_log_softmax(rows_f32, nvalid)
        out_ref[...] = rows_f32.astype(out_ref.dtype)

    # Phase 0: initialize the resident state with the streamed support block.
    @pl.when(t == 0)
    def _():
        rows = prev_ref[...]
        s_a[pl.ds(r0, tm), :] = rows.astype(s_a.dtype)

        @pl.when(t == last)              # iterations == 0 edge case
        def _():
            store_out(rows)

    # Phases >= 1:
    #   s_new[rows] = relu(adj_tile @ s_old * (1-alpha) + prev[rows] * alpha)
    # Ping-pong s_a / s_b so every tile of a phase reads the fully written
    # state of the previous phase (grid runs sequentially).
    def prop_step(read_ref, write_ref):
        def body():
            rows = jnp.dot(adj_ref[...], read_ref[...],        # bf16 x bf16
                           preferred_element_type=jnp.float32)  # f32 accumulate
            rows = rows * (1.0 - alpha) + prev_ref[...] * alpha
            rows = jnp.maximum(rows, 0.0)                       # ReLU
            write_ref[pl.ds(r0, tm), :] = rows.astype(write_ref.dtype)

            @pl.when(t == last)
            def _():
                store_out(rows)
        return body

    odd = jnp.logical_and(t >= 1, (t % 2) == 1)
    even = jnp.logical_and(t >= 1, (t % 2) == 0)
    pl.when(odd)(prop_step(s_a, s_b))     # 0 -> a, 1: a -> b
    pl.when(even)(prop_step(s_b, s_a))    # 2: b -> a, ...


def _prop_vmem_need(tm, n_pad, f_pad):
    return (2 * tm * n_pad * 2        # adj double buffer (bf16)
            + 2 * tm * f_pad * 4      # prev double buffer (f32)
            + 2 * tm * f_pad * 4      # out double buffer (f32)
            + 2 * n_pad * f_pad * 2)  # resident ping/pong state (bf16)


def _propagate(support_p, adj_bf16, *, alpha, iterations, tm, cap_bytes,
               fuse_tail=False, nvalid=None):
    n_pad, f_pad = support_p.shape
    assert adj_bf16.shape == (n_pad, n_pad)
    assert n_pad % tm == 0
    n_tiles = n_pad // tm
    nvalid = f_pad if nvalid is None else int(nvalid)

    kernel = functools.partial(_prop_kernel, alpha=float(alpha), tm=tm,
                               fuse_tail=fuse_tail, nvalid=nvalid)
    need = _prop_vmem_need(tm, n_pad, f_pad)

    return pl.pallas_call(
        kernel,
        out_shape=jax.ShapeDtypeStruct((n_pad, f_pad), jnp.float32),
        grid_spec=pltpu.PrefetchScalarGridSpec(
            num_scalar_prefetch=0,
            grid=(iterations + 1, n_tiles),
            in_specs=[
                # prev / support row tiles: used every phase (init + alpha blend).
                pl.BlockSpec((tm, f_pad), lambda t, i: (i, 0)),
                # adjacency row tiles (bf16): pinned during init, streamed per phase.
                pl.BlockSpec((tm, n_pad), lambda t, i: (jnp.where(t == 0, 0, i), 0)),
            ],
            # Pinned to block (0,0) for intermediate phases => no intermediate
            # HBM writeback; the final phase writes every row tile.
            out_specs=pl.BlockSpec(
                (tm, f_pad), lambda t, i: (jnp.where(t == iterations, i, 0), 0)),
            scratch_shapes=[
                pltpu.VMEM((n_pad, f_pad), jnp.bfloat16),   # state (ping)
                pltpu.VMEM((n_pad, f_pad), jnp.bfloat16),   # state (pong)
            ],
        ),
        compiler_params=_compiler_params(
            # Every row tile of a phase reads the full resident state written by
            # all tiles of the previous phase => both axes sequential.
            ("arbitrary", "arbitrary"), need, cap_bytes),
    )(support_p, adj_bf16)


# ---------------------------------------------------------------------------
# Full APPNP forward
# ---------------------------------------------------------------------------
def appnp_forward(x, head_weights, out_weight, adj, *, alpha, iterations):
    n, nfeat = x.shape
    nhid = head_weights[0].shape[1]
    nheads = len(head_weights)
    nclass = out_weight.shape[1]

    # Head fusion: cat([head_h(x)], dim=1) == propagate(x @ [W_1|...|W_H]).
    w_all = jnp.concatenate(list(head_weights), axis=1)          # [nfeat, nhid*nheads]

    cap = _vmem_capacity_bytes()
    budget = int(0.70 * cap)

    nfeat_pad = _round_up(nfeat, 128)
    f1 = nhid * nheads
    # Round wide hidden dims to 256 lanes (full-width v6e/v7x MXU passes); keep
    # 128 for the narrow case to avoid useless padding work.
    f1_pad = _round_up(f1, 256) if f1 > 128 else 128
    c_pad = _round_up(nclass, 256) if nclass > 128 else 128
    f_big = max(f1_pad, c_pad)

    # Generation-aware row-tile: largest of {512, 256, 128} whose VMEM need fits
    # the budget (512 typically on v5e/v6e's 128 MiB, 128/256 on v7x's 64 MiB).
    tm = 128
    for cand in (512, 256, 128):
        if cand > _round_up(n, 128):
            continue
        if _prop_vmem_need(cand, _round_up(n, cand), f_big) <= budget:
            tm = cand
            break
    n_pad = _round_up(n, tm)

    # Zero padding keeps the math exact: padded adj rows/cols and padded weight
    # rows/cols contribute zeros; padded class lanes are masked in log_softmax.
    x_p = _pad2d(x.astype(jnp.float32), n_pad, nfeat_pad)
    adj_bf16 = _pad2d(adj.astype(jnp.float32), n_pad, n_pad).astype(jnp.bfloat16)
    w_all_p = _pad2d(w_all.astype(jnp.float32), nfeat_pad, f1_pad)
    w_out_p = _pad2d(out_weight.astype(jnp.float32), f1_pad, c_pad)

    # TODO(synk): F.dropout is identity at inference (training=False); not modeled.
    # TODO(synk): torch.sparse_coo_tensor / spmm sparse storage not modeled; dense adj used.
    s1 = _project(x_p, w_all_p, tm=tm, cap_bytes=cap)
    h_p = _propagate(s1, adj_bf16, alpha=alpha, iterations=iterations,
                     tm=tm, cap_bytes=cap)
    s2 = _project(h_p, w_out_p, tm=tm, cap_bytes=cap)
    y_p = _propagate(s2, adj_bf16, alpha=alpha, iterations=iterations,
                     tm=tm, cap_bytes=cap, fuse_tail=True, nvalid=nclass)
    return y_p[:n, :nclass]


# ---------------------------------------------------------------------------
# Deterministic parameter / input construction
# ---------------------------------------------------------------------------
def xavier_uniform(key, shape, gain=1.414):
    fan_in, fan_out = shape
    limit = gain * jnp.sqrt(6.0 / (fan_in + fan_out))
    return jax.random.uniform(key, shape, jnp.float32, -limit, limit)


if __name__ == "__main__":
    N = 16            # number of graph nodes
    nfeat = 32
    nhid = 8
    nclass = 4
    nheads = 2
    alpha = 0.1
    iterations = 3

    key = jax.random.PRNGKey(0)
    k_x, k_adj, k_w0, k_w1, k_wo = jax.random.split(key, 5)

    # Node features.
    x = jax.random.normal(k_x, (N, nfeat), jnp.float32)

    # Deterministic row-normalized adjacency with self-loops.
    a = (jax.random.uniform(k_adj, (N, N)) < 0.3).astype(jnp.float32)
    a = jnp.maximum(a, a.T)                      # symmetrize
    a = a + jnp.eye(N, dtype=jnp.float32)        # self-loops
    adj = a / jnp.sum(a, axis=1, keepdims=True)  # row-normalize

    # Xavier-uniform weights (gain=1.414) — one per head + output layer.
    head_weights = [
        xavier_uniform(k_w0, (nfeat, nhid)),
        xavier_uniform(k_w1, (nfeat, nhid)),
    ][:nheads]
    out_weight = xavier_uniform(k_wo, (nhid * nheads, nclass))

    out = appnp_forward(x, head_weights, out_weight, adj,
                        alpha=alpha, iterations=iterations)
    out = jax.block_until_ready(out)

    # Pure-JAX f32 reference (same math as the PyTorch module at inference).
    def ref_layer(xv, w):
        s = xv @ w
        prev = s
        for _ in range(iterations):
            s = jnp.maximum(adj @ s * (1.0 - alpha) + prev * alpha, 0.0)
        return s

    ref_h = jnp.concatenate([ref_layer(x, w) for w in head_weights], axis=1)
    ref_y = jax.nn.log_softmax(jax.nn.elu(ref_layer(ref_h, out_weight)), axis=1)

    assert out.shape == (N, nclass)
    assert bool(jnp.all(jnp.isfinite(out)))
    # log_softmax rows should (approximately) sum to 1 in prob space.
    assert bool(jnp.allclose(jnp.sum(jnp.exp(out), axis=1), 1.0, atol=1e-4))
    # Loose tolerance: propagation runs with bf16 adjacency/state (f32 accumulate),
    # reference is pure f32.
    assert float(jnp.max(jnp.abs(out - ref_y))) < 2e-1
    print("KERNEL_OK")
</pallas_src>

<mosaic_0001>
module attributes {stable_mosaic.version = 11 : i64} {
  func.func @_proj_kernel(%arg0: i32, %arg1: memref<128x128xf32, #tpu.memory_space<vmem>>, %arg2: memref<128x128xf32, #tpu.memory_space<vmem>>, %arg3: memref<128x128xf32, #tpu.memory_space<vmem>>) attributes {dimension_semantics = [#tpu.dimension_semantics<parallel>], iteration_bounds = array<i64: 1>, scalar_prefetch = 0 : i64, scratch_operands = 0 : i64, tpu.core_type = #tpu.core_type<tc>, window_params = [{transform_indices = @transform_0, window_bounds = array<i64: 128, 128>}, {pipeline_mode = #tpu.pipeline_mode<synchronous>, transform_indices = @transform_1, window_bounds = array<i64: 128, 128>}, {transform_indices = @transform_2, window_bounds = array<i64: 128, 128>}]} {
    %c0 = arith.constant 0 : index
    %c0_0 = arith.constant 0 : index
    %0 = vector.load %arg1[%c0, %c0_0] : memref<128x128xf32, #tpu.memory_space<vmem>>, vector<128x128xf32>
    %c0_1 = arith.constant 0 : index
    %c0_2 = arith.constant 0 : index
    %1 = vector.load %arg2[%c0_1, %c0_2] : memref<128x128xf32, #tpu.memory_space<vmem>>, vector<128x128xf32>
    %cst = arith.constant dense<0.000000e+00> : vector<128x128xf32>
    %2 = tpu.matmul %0, %1, %cst {dimension_numbers = #tpu.dot_dimension_numbers<[1], [0], [0], [1], [0, 0, 1, 1], [], []>} : vector<128x128xf32>, vector<128x128xf32>, vector<128x128xf32> -> vector<128x128xf32>
    %c0_3 = arith.constant 0 : index
    %c0_4 = arith.constant 0 : index
    %3 = vector.load %arg3[%c0_3, %c0_4] : memref<128x128xf32, #tpu.memory_space<vmem>>, vector<128x128xf32>
    tpu.vector_store %arg3[%c0_3, %c0_4], %2 {strides = array<i32>} : memref<128x128xf32, #tpu.memory_space<vmem>>, vector<128x128xf32>,
    return
  }
  func.func @transform_0(%arg0: i32) -> (i32, i32) {
    %c0_i32 = arith.constant 0 : i32
    %c0_i32_0 = arith.constant 0 : i32
    return %arg0, %c0_i32 : i32, i32
  }
  func.func @transform_1(%arg0: i32) -> (i32, i32) {
    %c0_i32 = arith.constant 0 : i32
    %c0_i32_0 = arith.constant 0 : i32
    %c0_i32_1 = arith.constant 0 : i32
    return %c0_i32, %c0_i32_0 : i32, i32
  }
  func.func @transform_2(%arg0: i32) -> (i32, i32) {
    %c0_i32 = arith.constant 0 : i32
    %c0_i32_0 = arith.constant 0 : i32
    return %arg0, %c0_i32 : i32, i32
  }
}

</mosaic_0001>

<bundles_post_ra>
// kernel: tpu_custom_call.1
= control target key start
LH: loop header
LB: loop body
LE: loop exit
PB: predicated region body
PF: predicated region fallthrough
CT: control target
= control target key end

     0   :  { %7 = vsyncpa [#allocation3], 0  ;;  %s529_s0 = inlined_call_operand.hbm [shape: f32[128,128], index: 0, kind: input, shape index: {}]   ;;  %s530_s1 = inlined_call_operand.hbm [shape: f32[128,128], index: 1, kind: input, shape index: {}]   ;;  %s531_s2 = inlined_call_operand.hbm [shape: f32[128,128], index: 2, kind: output, shape index: {}]  }
   0x1   :  { %8 = vsyncpa [#allocation6], 0 }
   0x2   :  { %9 = vsyncpa [#allocation4], 0  ;;  %s464_s9 = smov [#allocation2]   ;;  %s392_s13 = scalar_lea.hbm %s529_s0, 2048 }
   0x3   :  { %s15_s10 = sshll.u32 %s464_s9, 4  ;;  %p393_p0 = scmp.ne.s32.totalorder %s529_s0, %s392_s13  ;;  %s16_s10 = int_to_ptr.vmem [resolvable:$true] %s15_s10 }
   0x4   :  { %p396_p1 = scmp.lt.u32.totalorder %s392_s13, %s529_s0 }
   0x6   :  { %p398_p2 = pnand %p396_p1, %p393_p0 }
   0x8   :  { %401 = shalt.err (!%p398_p2)
}
   0x9   :  { %s402_s18 = scalar_lea.vmem %s16_s10, 2048  ;;  %p407_p4 = scmp.lt.s32.totalorder %s16_s10, %s16_s10 }
   0xa   :  { %p403_p3 = scmp.ne.s32.totalorder %s16_s10, %s402_s18  ;;  %p408_p5 = scmp.lt.s32.totalorder %s402_s18, %s402_s18 }
   0xc   :  { %p409_p6 = por %p408_p5, %p407_p4 }
   0xe   :  { %p410_p7 = pnand %p409_p6, %p403_p3 }
  0x10   :  { %413 = shalt.err (!%p410_p7)
}
  0x11   :  { %s465_s19 = smov 128   ;;  %s466_s20 = smov 8  }
  0x12   :  { %21 = dma.hbm_to_vmem [thread:$0]  %s529_s0, 2048, %s16_s10, [#allocation3], %s465_s19, %s465_s19, %s466_s20  }
  0x13   :  { %s467_s23 = smov [#allocation5]   ;;  %s414_s27 = scalar_lea.hbm %s530_s1, 2048 }
  0x14   :  { %s27_s24 = sshll.u32 %s467_s23, 4  ;;  %p415_p8 = scmp.ne.s32.totalorder %s530_s1, %s414_s27  ;;  %s28_s24 = int_to_ptr.vmem [resolvable:$true] %s27_s24 }
  0x15   :  { %p418_p9 = scmp.lt.u32.totalorder %s414_s27, %s530_s1 }
  0x17   :  { %p420_p10 = pnand %p418_p9, %p415_p8 }
  0x19   :  { %423 = shalt.err (!%p420_p10)
}
  0x1a   :  { %s424_s4 = scalar_lea.vmem %s28_s24, 2048  ;;  %p429_p12 = scmp.lt.s32.totalorder %s28_s24, %s28_s24 }
  0x1b   :  { %p425_p11 = scmp.ne.s32.totalorder %s28_s24, %s424_s4  ;;  %p430_p13 = scmp.lt.s32.totalorder %s424_s4, %s424_s4 }
  0x1d   :  { %p431_p0 = por %p430_p13, %p429_p12 }
  0x1f   :  { %p432_p1 = pnand %p431_p0, %p425_p11 }
  0x21   :  { %435 = shalt.err (!%p432_p1)
}
  0x22   :  { %33 = dma.hbm_to_vmem [thread:$0]  %s530_s1, 2048, %s28_s24, [#allocation6], %s465_s19, %s465_s19, %s466_s20  }
  0x23   :  { %458 = dma.done.wait [#allocation3], 2048  }
  0x24   :  { %459 = vsyncadd [#allocation3], 4294965248 }
  0x25   :  { %460 = dma.done.wait [#allocation6], 2048  }
  0x26   :  { %461 = vsyncadd [#allocation6], 4294965248  ;;  %v56_v0 = vld [vmem:[#allocation5] sm:$0xff]  ;;  %v57_v1 = vld [vmem:[#allocation5 + $0x8] sm:$0xff]  ;;  %s468_s1 = smov [#allocation7]  }
  0x27   :  { %v58_v2 = vld [vmem:[#allocation5 + $0x10] sm:$0xff]  ;;  %v339_v3 = vpack.c.bf16 %v57_v1, %v56_v0  ;;  %v59_v4 = vld [vmem:[#allocation5 + $0x18] sm:$0xff]  ;;  %v60_v6 = vld [vmem:[#allocation5 + $0x20] sm:$0xff]  ;;  %s238_s6 = sshll.u32 %s468_s1, 4  ;;  %s239_s6 = int_to_ptr.vmem [resolvable:$true] %s238_s6 }
  0x28   :  { %v343_v5 = vpack.c.bf16 %v59_v4, %v58_v2  ;;  %v61_v7 = vld [vmem:[#allocation5 + $0x28] sm:$0xff]  ;;  %v40_v9 = vld [vmem:[#allocation2] sm:$0xff]  ;;  %v62_v11 = vld [vmem:[#allocation5 + $0x30] sm:$0xff]  ;;  %s436_s7 = scalar_lea.vmem %s239_s6, 2048  ;;  %p441_p3 = scmp.lt.s32.totalorder %s239_s6, %s239_s6 }
  0x29   :  { %340 = vmatprep.subr.bf16.mxu0 %v339_v3  ;;  %371 = vmatprep.subr.bf16.mxu1 %v339_v3  ;;  %v347_v8 = vpack.c.bf16 %v61_v7, %v60_v6  ;;  %v48_v10 = vld [vmem:[#allocation2 + $0x40] sm:$0xff]  ;;  %v63_v12 = vld [vmem:[#allocation5 + $0x38] sm:$0xff]  ;;  %v65_v15 = vld [vmem:[#allocation5 + $0x48] sm:$0xff]  ;;  %p437_p2 = scmp.ne.s32.totalorder %s239_s6, %s436_s7  ;;  %p442_p4 = scmp.lt.s32.totalorder %s436_s7, %s436_s7 }
  0x2a   :  { %342 = vmatpush3.bf16.msra.mxu0 %v339_v3  ;;  %379 = vmatpush3.bf16.msra.mxu1 %v339_v3  ;;  %v351_v13 = vpack.c.bf16 %v63_v12, %v62_v11  ;;  %v64_v14 = vld [vmem:[#allocation5 + $0x40] sm:$0xff]  ;;  %v66_v17 = vld [vmem:[#allocation5 + $0x50] sm:$0xff]  ;;  %v67_v18 = vld [vmem:[#allocation5 + $0x58] sm:$0xff] }
  0x2b   :  { %344 = vmatprep.subr.bf16.mxu0 %v343_v5  ;;  %372 = vmatprep.subr.bf16.mxu1 %v343_v5  ;;  %v355_v16 = vpack.c.bf16 %v65_v15, %v64_v14  ;;  %v359_v19 = vpack.c.bf16 %v67_v18, %v66_v17  ;;  %v68_v20 = vld [vmem:[#allocation5 + $0x60] sm:$0xff]  ;;  %v69_v21 = vld [vmem:[#allocation5 + $0x68] sm:$0xff]  ;;  %v70_v23 = vld [vmem:[#allocation5 + $0x70] sm:$0xff]  ;;  %p443_p5 = por %p442_p4, %p441_p3 }
  0x2c   :  { %315 = vmatprep.mubr.f32.mxu0 %v40_v9  ;;  %327 = vmatprep.mubr.f32.mxu1 %v48_v10  ;;  %v363_v22 = vpack.c.bf16 %v69_v21, %v68_v20  ;;  %v71_v24 = vld [vmem:[#allocation5 + $0x78] sm:$0xff]  ;;  %v41_v26 = vld [vmem:[#allocation2 + $0x8] sm:$0xff]  ;;  %v42_v28 = vld [vmem:[#allocation2 + $0x10] sm:$0xff] }
  0x2d   :  { %v367_v25 = vpack.c.bf16 %v71_v24, %v70_v23  ;;  %v49_v27 = vld [vmem:[#allocation2 + $0x48] sm:$0xff]  ;;  %v50_v29 = vld [vmem:[#allocation2 + $0x50] sm:$0xff]  ;;  %v43_v30 = vld [vmem:[#allocation2 + $0x18] sm:$0xff]  ;;  %p444_p6 = pnand %p443_p5, %p437_p2 }
  0x2e   :  { %346 = vmatpush3.bf16.msra.mxu0 %v343_v5  ;;  %380 = vmatpush3.bf16.msra.mxu1 %v343_v5  ;;  %v51_v31 = vld [vmem:[#allocation2 + $0x58] sm:$0xff]  ;;  %v44_v32 = vld [vmem:[#allocation2 + $0x20] sm:$0xff]  ;;  %v45_v34 = vld [vmem:[#allocation2 + $0x28] sm:$0xff] }
  0x2f   :  { %348 = vmatprep.subr.bf16.mxu0 %v347_v8  ;;  %373 = vmatprep.subr.bf16.mxu1 %v347_v8  ;;  %v52_v33 = vld [vmem:[#allocation2 + $0x60] sm:$0xff]  ;;  %v53_v35 = vld [vmem:[#allocation2 + $0x68] sm:$0xff]  ;;  %v46_v36 = vld [vmem:[#allocation2 + $0x30] sm:$0xff] }
  0x30   :  { %v54_v37 = vld [vmem:[#allocation2 + $0x70] sm:$0xff]  ;;  %v47_v38 = vld [vmem:[#allocation2 + $0x38] sm:$0xff] }
  0x31   :  { %v55_v39 = vld [vmem:[#allocation2 + $0x78] sm:$0xff] }
  0x32   :  { %350 = vmatpush3.bf16.msra.mxu0 %v347_v8  ;;  %381 = vmatpush3.bf16.msra.mxu1 %v347_v8 }
  0x33   :  { %352 = vmatprep.subr.bf16.mxu0 %v351_v13  ;;  %374 = vmatprep.subr.bf16.mxu1 %v351_v13 }
  0x36   :  { %354 = vmatpush3.bf16.msra.mxu0 %v351_v13  ;;  %382 = vmatpush3.bf16.msra.mxu1 %v351_v13 }
  0x37   :  { %356 = vmatprep.subr.bf16.mxu0 %v355_v16  ;;  %375 = vmatprep.subr.bf16.mxu1 %v355_v16 }
  0x3a   :  { %358 = vmatpush3.bf16.msra.mxu0 %v355_v16  ;;  %383 = vmatpush3.bf16.msra.mxu1 %v355_v16 }
  0x3b   :  { %360 = vmatprep.subr.bf16.mxu0 %v359_v19  ;;  %376 = vmatprep.subr.bf16.mxu1 %v359_v19 }
  0x3e   :  { %362 = vmatpush3.bf16.msra.mxu0 %v359_v19  ;;  %384 = vmatpush3.bf16.msra.mxu1 %v359_v19 }
  0x3f   :  { %364 = vmatprep.subr.bf16.mxu0 %v363_v22  ;;  %377 = vmatprep.subr.bf16.mxu1 %v363_v22 }
  0x42   :  { %366 = vmatpush3.bf16.msra.mxu0 %v363_v22  ;;  %385 = vmatpush3.bf16.msra.mxu1 %v363_v22 }
  0x43   :  { %368 = vmatprep.subr.bf16.mxu0 %v367_v25  ;;  %378 = vmatprep.subr.bf16.mxu1 %v367_v25 }
  0x46   :  { %370 = vmatpush3.bf16.msra.mxu0 %v367_v25  ;;  %386 = vmatpush3.bf16.msra.mxu1 %v367_v25 }
  0x49   :  { %316 = vmatmul.mubr.f32.vlgmr.msra.gmra.mrb[0].mxu0 %v41_v26  ;;  %328 = vmatmul.mubr.f32.vlgmr.msra.gmra.mrb[0].mxu1 %v49_v27 }
  0x4a   :  { %318 = vmatprep.mubr.f32.mxu0 %v42_v28  ;;  %330 = vmatprep.mubr.f32.mxu1 %v50_v29 }
  0x4d   :  { %319 = vmatmul.mubr.f32.gmra.mrb[2].mxu0 %v43_v30  ;;  %331 = vmatmul.mubr.f32.gmra.mrb[2].mxu1 %v51_v31 }
  0x4e   :  { %321 = vmatprep.mubr.f32.mxu0 %v44_v32  ;;  %333 = vmatprep.mubr.f32.mxu1 %v52_v33 }
  0x51   :  { %322 = vmatmul.mubr.f32.gmra.mrb[4].mxu0 %v45_v34  ;;  %334 = vmatmul.mubr.f32.gmra.mrb[4].mxu1 %v53_v35 }
  0x52   :  { %324 = vmatprep.mubr.f32.mxu0 %v46_v36  ;;  %336 = vmatprep.mubr.f32.mxu1 %v54_v37 }
  0x55   :  { %325 = vmatmul.mubr.f32.gmra.mrb[6].mxu0 %v47_v38  ;;  %337 = vmatmul.mubr.f32.gmra.mrb[6].mxu1 %v55_v39 }
 0x11c   :  { %v317_v40 = vpop.f32.mrb[0].mxu0  ;;  %v329_v41 = vpop.f32.mrb[0].mxu1 }
 0x11d   :  { %218 = vst [vmem:[#allocation7 + $0x8] sm:$0xff] %v317_v40  ;;  %226 = vst [vmem:[#allocation7 + $0x48] sm:$0xff] %v329_v41  ;;  %v138_v42 = vpop.f32.mrb[1].mxu0  ;;  %v178_v43 = vpop.f32.mrb[1].mxu1 }
 0x11e   :  { %217 = vst [vmem:[#allocation7] sm:$0xff] %v138_v42  ;;  %225 = vst [vmem:[#allocation7 + $0x40] sm:$0xff] %v178_v43 }
 0x120   :  { %v320_v44 = vpop.f32.mrb[2].mxu0  ;;  %v332_v45 = vpop.f32.mrb[2].mxu1 }
 0x121   :  { %220 = vst [vmem:[#allocation7 + $0x18] sm:$0xff] %v320_v44  ;;  %228 = vst [vmem:[#allocation7 + $0x58] sm:$0xff] %v332_v45  ;;  %v148_v46 = vpop.f32.mrb[3].mxu0  ;;  %v188_v47 = vpop.f32.mrb[3].mxu1 }
 0x122   :  { %219 = vst [vmem:[#allocation7 + $0x10] sm:$0xff] %v148_v46  ;;  %227 = vst [vmem:[#allocation7 + $0x50] sm:$0xff] %v188_v47 }
 0x124   :  { %v323_v48 = vpop.f32.mrb[4].mxu0  ;;  %v335_v49 = vpop.f32.mrb[4].mxu1 }
 0x125   :  { %222 = vst [vmem:[#allocation7 + $0x28] sm:$0xff] %v323_v48  ;;  %230 = vst [vmem:[#allocation7 + $0x68] sm:$0xff] %v335_v49  ;;  %v158_v50 = vpop.f32.mrb[5].mxu0  ;;  %v198_v51 = vpop.f32.mrb[5].mxu1 }
 0x126   :  { %221 = vst [vmem:[#allocation7 + $0x20] sm:$0xff] %v158_v50  ;;  %229 = vst [vmem:[#allocation7 + $0x60] sm:$0xff] %v198_v51 }
 0x128   :  { %v326_v52 = vpop.f32.mrb[6].mxu0  ;;  %v338_v53 = vpop.f32.mrb[6].mxu1 }
 0x129   :  { %224 = vst [vmem:[#allocation7 + $0x38] sm:$0xff] %v326_v52  ;;  %232 = vst [vmem:[#allocation7 + $0x78] sm:$0xff] %v338_v53  ;;  %v168_v54 = vpop.f32.mrb[7].mxu0  ;;  %v208_v55 = vpop.f32.mrb[7].mxu1 }
 0x12a   :  { %223 = vst [vmem:[#allocation7 + $0x30] sm:$0xff] %v168_v54  ;;  %231 = vst [vmem:[#allocation7 + $0x70] sm:$0xff] %v208_v55 }
 0x12b   :  { %447 = shalt.err (!%p444_p6)
}
 0x12c   :  { %s448_s10 = scalar_lea.hbm %s531_s2, 2048 }
 0x12d   :  { %p449_p7 = scmp.ne.s32.totalorder %s531_s2, %s448_s10  ;;  %p452_p8 = scmp.lt.u32.totalorder %s448_s10, %s531_s2 }
 0x12f   :  { %p454_p9 = pnand %p452_p8, %p449_p7 }
 0x131   :  { %457 = shalt.err (!%p454_p9)
}
 0x132   :  { %244 = dma.vmem_to_hbm [thread:$0]  %s239_s6, 2048, %s531_s2, [#allocation4], %s465_s19, %s465_s19, %s466_s20  }
 0x133   :  { %462 = dma.done.wait [#allocation4], 2048  }
 0x134   :  { %463 = vsyncadd [#allocation4], 4294965248 }
 0x135   :  { %248 = vsyncpa [#allocation3], 1 }
 0x136   :  { %249 = vsyncpa [#allocation6], 1 }
 0x137   :  { %250 = vsyncpa [#allocation4], 1 }

</bundles_post_ra>
